<compile_context>
chip_gen: v6e
topology: v6e:2x2x1
jax: 0.10.0
libtpu: 0.0.40
codegen_flags: <defaults>
</compile_context>

<pallas_src>
import functools
import math

import jax
import jax.numpy as jnp
from jax.experimental import pallas as pl
from jax.experimental.pallas import tpu as pltpu

LANES = 128
SUBLANES = 8
DEFAULT_TILE_ROWS = 2048            # 2048 x 128 x f32 = 1 MiB per input block
NUM_PARTIALS = 2                    # leading parallel axis (engages both TCs on v7x)
VMEM_LIMIT_BYTES = 32 * 1024 * 1024 # safe on v5e/v6e/v7x; well above what we use


def _round_up(x, m):
    return ((x + m - 1) // m) * m


# ---------------------------------------------------------------------------
# Kernels
# ---------------------------------------------------------------------------
def _mse_reduce_kernel(*refs, tile_rows, rows, steps_per_partial, scale,
                       has_weight, needs_mask):
    """Per-partial streamed sum of (pred-target)^2 [* weight], pre-scaled by `scale`.

    Accumulates into an (8, 128) f32 VMEM accumulator with pure VPU adds; writes the
    scaled accumulator out on the last step of the inner (arbitrary) grid axis.
    """
    if has_weight:
        pred_ref, tgt_ref, w_ref, out_ref, acc_ref = refs
    else:
        pred_ref, tgt_ref, out_ref, acc_ref = refs
        w_ref = None

    c = pl.program_id(0)  # partial index (parallel)
    i = pl.program_id(1)  # step within partial (arbitrary / reduction)

    @pl.when(i == 0)
    def _():
        acc_ref[...] = jnp.zeros_like(acc_ref)

    d = pred_ref[...].astype(jnp.float32) - tgt_ref[...].astype(jnp.float32)
    sq = d * d
    if has_weight:
        sq = sq * w_ref[...].astype(jnp.float32)

    if needs_mask:
        # Logical (unclamped) element-row offset of this block; rows at or beyond
        # `rows` (ragged last block / clamped duplicate blocks) contribute zero.
        start = (c * steps_per_partial + i) * tile_rows
        valid = rows - start
        row_ids = jax.lax.broadcasted_iota(jnp.int32, sq.shape, 0)
        sq = jnp.where(row_ids < valid, sq, 0.0)

    # Fold (tile_rows, 128) -> (8, 128) with element-wise vreg adds (VPU only).
    acc_ref[...] += jnp.sum(sq.reshape(tile_rows // SUBLANES, SUBLANES, LANES), axis=0)

    @pl.when(i == pl.num_programs(1) - 1)
    def _():
        out_ref[...] = acc_ref[...] * jnp.float32(scale)


def _mse_none_kernel(*refs, loss_weight, has_weight):
    """Elementwise loss_weight * (pred - target)^2 [* weight]."""
    if has_weight:
        pred_ref, tgt_ref, w_ref, out_ref = refs
    else:
        pred_ref, tgt_ref, out_ref = refs
        w_ref = None

    d = pred_ref[...].astype(jnp.float32) - tgt_ref[...].astype(jnp.float32)
    sq = d * d
    if has_weight:
        sq = sq * w_ref[...].astype(jnp.float32)
    out_ref[...] = (jnp.float32(loss_weight) * sq).astype(out_ref.dtype)


# ---------------------------------------------------------------------------
# Wrapper
# ---------------------------------------------------------------------------
def mse_loss_pallas(pred, target, weight=None, loss_weight=1.0, reduction="mean"):
    if reduction not in ("none", "mean", "sum"):
        raise ValueError(f"Unsupported reduction mode: {reduction}.")

    orig_shape = pred.shape
    n_valid = math.prod(orig_shape)
    has_weight = weight is not None

    # Lane-dense [rows, 128] view. The reshape is free (contiguous); only a ragged
    # element count (not a multiple of 128) needs a minimal zero-pad (zeros add 0).
    rows = pl.cdiv(n_valid, LANES)
    padded_len = rows * LANES

    def to2d(x):
        flat = x.reshape(-1)
        if padded_len != n_valid:
            flat = jnp.pad(flat, (0, padded_len - n_valid))
        return flat.reshape(rows, LANES)

    inputs = [to2d(pred), to2d(target)]
    if has_weight:
        inputs.append(to2d(weight))

    # Tile as large as possible (amortize per-step overhead), capped at the array size
    # (single-block fast path for small inputs). Multiple of 16 -> valid for f32 & bf16.
    tile_rows = min(DEFAULT_TILE_ROWS, _round_up(rows, 16))
    total_steps = pl.cdiv(rows, tile_rows)

    if reduction == "none":
        tile_spec = pl.BlockSpec((tile_rows, LANES), lambda i: (i, 0))
        kernel = functools.partial(
            _mse_none_kernel, loss_weight=float(loss_weight), has_weight=has_weight)
        out2d = pl.pallas_call(
            kernel,
            out_shape=jax.ShapeDtypeStruct((rows, LANES), pred.dtype),
            grid_spec=pltpu.PrefetchScalarGridSpec(
                num_scalar_prefetch=0,
                grid=(total_steps,),
                in_specs=[tile_spec] * len(inputs),
                out_specs=tile_spec),
            compiler_params=pltpu.CompilerParams(
                dimension_semantics=("parallel",),
                vmem_limit_bytes=VMEM_LIMIT_BYTES),
        )(*inputs)
        out_flat = out2d.reshape(-1)
        if padded_len != n_valid:
            out_flat = out_flat[:n_valid]
        return out_flat.reshape(orig_shape)

    # ---- 'mean' / 'sum': streamed reduction into per-partial (8,128) accumulators.
    num_partials = NUM_PARTIALS if total_steps >= NUM_PARTIALS else 1
    steps_per_partial = pl.cdiv(total_steps, num_partials)
    # If the (partials x steps x tile_rows) logical coverage over-shoots the array
    # (ragged last block and/or duplicated clamped trailing steps), mask in-kernel.
    needs_mask = (num_partials * steps_per_partial * tile_rows) != rows

    def in_map(c, i):
        # Clamp duplicated trailing steps onto the last real block; their rows are
        # zero-masked inside the kernel so they contribute nothing.
        return (jnp.minimum(c * steps_per_partial + i, total_steps - 1), 0)

    tile_spec = pl.BlockSpec((tile_rows, LANES), in_map)

    scale = float(loss_weight)
    if reduction == "mean":
        # BasicSR's weighted_loss reduces with loss.mean() over all elements
        # (element-count denominator), which is what we implement here.
        scale = scale / float(n_valid)

    kernel = functools.partial(
        _mse_reduce_kernel,
        tile_rows=tile_rows, rows=rows, steps_per_partial=steps_per_partial,
        scale=scale, has_weight=has_weight, needs_mask=needs_mask)

    partials = pl.pallas_call(
        kernel,
        out_shape=jax.ShapeDtypeStruct((num_partials * SUBLANES, LANES), jnp.float32),
        grid_spec=pltpu.PrefetchScalarGridSpec(
            num_scalar_prefetch=0,
            grid=(num_partials, steps_per_partial),
            in_specs=[tile_spec] * len(inputs),
            out_specs=pl.BlockSpec((SUBLANES, LANES), lambda c, i: (c, 0)),
            scratch_shapes=[pltpu.VMEM((SUBLANES, LANES), jnp.float32)]),
        compiler_params=pltpu.CompilerParams(
            dimension_semantics=("parallel", "arbitrary"),
            vmem_limit_bytes=VMEM_LIMIT_BYTES),
    )(*inputs)

    # Tiny epilogue: sum the pre-scaled per-partial accumulators to a scalar.
    return jnp.sum(partials)


class MSELossPallas:
    """Mirror of the PyTorch MSELoss module (no learned parameters)."""

    def __init__(self, loss_weight=1.0, reduction="mean"):
        if reduction not in ("none", "mean", "sum"):
            raise ValueError(f"Unsupported reduction mode: {reduction}.")
        self.loss_weight = loss_weight
        self.reduction = reduction

    def __call__(self, pred, target, weight=None, **kwargs):
        return mse_loss_pallas(
            pred, target, weight,
            loss_weight=self.loss_weight, reduction=self.reduction)


# ---------------------------------------------------------------------------
# Demo / self-check
# ---------------------------------------------------------------------------
if __name__ == "__main__":
    key = jax.random.PRNGKey(0)
    k1, k2, k3, k4 = jax.random.split(key, 4)

    N, C, H, W = 2, 4, 16, 16  # NCHW, as in the PyTorch module docstring
    pred = jax.random.normal(k1, (N, C, H, W), dtype=jnp.float32)
    target = jax.random.normal(k2, (N, C, H, W), dtype=jnp.float32)
    weight = jax.random.uniform(k3, (N, C, H, W), dtype=jnp.float32)

    loss_mod = MSELossPallas(loss_weight=1.0, reduction="mean")

    # default path: mean, no weight
    out_mean = jax.block_until_ready(loss_mod(pred, target))
    ref_mean = jnp.mean((pred - target) ** 2)
    assert jnp.allclose(out_mean, ref_mean, rtol=1e-5, atol=1e-5)

    # weighted mean
    out_wmean = jax.block_until_ready(loss_mod(pred, target, weight=weight))
    ref_wmean = jnp.mean(((pred - target) ** 2) * weight)
    assert jnp.allclose(out_wmean, ref_wmean, rtol=1e-5, atol=1e-5)

    # sum reduction with loss_weight
    out_sum = jax.block_until_ready(
        MSELossPallas(loss_weight=2.0, reduction="sum")(pred, target))
    ref_sum = 2.0 * jnp.sum((pred - target) ** 2)
    assert jnp.allclose(out_sum, ref_sum, rtol=1e-5, atol=1e-4)

    # none reduction (elementwise, weighted)
    out_none = jax.block_until_ready(
        MSELossPallas(loss_weight=1.0, reduction="none")(pred, target, weight=weight))
    ref_none = ((pred - target) ** 2) * weight
    assert out_none.shape == (N, C, H, W)
    assert jnp.allclose(out_none, ref_none, rtol=1e-5, atol=1e-6)

    # Ragged element count (not a multiple of 128): minimal pad + in-kernel mask path.
    pr = jax.random.normal(k1, (2, 4, 40, 37), dtype=jnp.float32)
    tr = jax.random.normal(k2, (2, 4, 40, 37), dtype=jnp.float32)
    out_r = jax.block_until_ready(MSELossPallas(reduction="sum")(pr, tr))
    ref_r = jnp.sum((pr - tr) ** 2)
    assert jnp.allclose(out_r, ref_r, rtol=1e-5, atol=1e-3)

    # Multi-tile / two-partial path (rows > one tile, odd step count): exercises the
    # parallel partial-sum axis, the partial-last-block mask and the clamped block.
    pm = jax.random.normal(k1, (6, 5, 160, 128), dtype=jnp.float32)
    tm_ = jax.random.normal(k2, (6, 5, 160, 128), dtype=jnp.float32)
    wm = jax.random.uniform(k4, (6, 5, 160, 128), dtype=jnp.float32)
    out_m = jax.block_until_ready(MSELossPallas(reduction="mean")(pm, tm_, weight=wm))
    ref_m = jnp.mean(((pm - tm_) ** 2) * wm)
    assert jnp.allclose(out_m, ref_m, rtol=1e-5, atol=1e-5)

    # bf16 inputs stay bf16 in HBM and are cast to f32 inside the kernel.
    pb = pred.astype(jnp.bfloat16)
    tb = target.astype(jnp.bfloat16)
    out_b = jax.block_until_ready(MSELossPallas(reduction="mean")(pb, tb))
    ref_b = jnp.mean((pb.astype(jnp.float32) - tb.astype(jnp.float32)) ** 2)
    assert jnp.allclose(out_b, ref_b, rtol=1e-5, atol=1e-5)

    print("KERNEL_OK")
</pallas_src>

<mosaic_0001>
module attributes {stable_mosaic.version = 11 : i64} {
  func.func @_mse_reduce_kernel(%arg0: i32, %arg1: i32, %arg2: memref<16x128xf32, #tpu.memory_space<vmem>>, %arg3: memref<16x128xf32, #tpu.memory_space<vmem>>, %arg4: memref<8x128xf32, #tpu.memory_space<vmem>>, %arg5: memref<8x128xf32, #tpu.memory_space<vmem>>) attributes {dimension_semantics = [#tpu.dimension_semantics<parallel>, #tpu.dimension_semantics<arbitrary>], iteration_bounds = array<i64: 1, 1>, scalar_prefetch = 0 : i64, scratch_operands = 1 : i64, tpu.core_type = #tpu.core_type<tc>, window_params = [{transform_indices = @transform_0, window_bounds = array<i64: 16, 128>}, {transform_indices = @transform_1, window_bounds = array<i64: 16, 128>}, {transform_indices = @transform_2, window_bounds = array<i64: 8, 128>}]} {
    %c0_i32 = arith.constant 0 : i32
    %0 = arith.cmpi eq, %arg1, %c0_i32 : i32
    %1 = arith.extui %0 : i1 to i32
    %c0_i32_0 = arith.constant 0 : i32
    %2 = arith.cmpi ne, %1, %c0_i32_0 : i32
    scf.if %2 {
      %cst_10 = arith.constant 0.000000e+00 : f32
      %15 = vector.broadcast %cst_10 : f32 to vector<8x128xf32>
      %c0_11 = arith.constant 0 : index
      %c0_12 = arith.constant 0 : index
      %16 = vector.load %arg5[%c0_11, %c0_12] : memref<8x128xf32, #tpu.memory_space<vmem>>, vector<8x128xf32>
      tpu.vector_store %arg5[%c0_11, %c0_12], %15 {strides = array<i32>} : memref<8x128xf32, #tpu.memory_space<vmem>>, vector<8x128xf32>,
    } else {
    }
    %c0 = arith.constant 0 : index
    %c0_1 = arith.constant 0 : index
    %3 = vector.load %arg2[%c0, %c0_1] : memref<16x128xf32, #tpu.memory_space<vmem>>, vector<16x128xf32>
    %c0_2 = arith.constant 0 : index
    %c0_3 = arith.constant 0 : index
    %4 = vector.load %arg3[%c0_2, %c0_3] : memref<16x128xf32, #tpu.memory_space<vmem>>, vector<16x128xf32>
    %5 = arith.subf %3, %4 : vector<16x128xf32>
    %6 = arith.mulf %5, %5 : vector<16x128xf32>
    %c0_4 = arith.constant 0 : index
    %c0_5 = arith.constant 0 : index
    %7 = vector.load %arg5[%c0_4, %c0_5] : memref<8x128xf32, #tpu.memory_space<vmem>>, vector<8x128xf32>
    %8 = vector.shape_cast %6 : vector<16x128xf32> to vector<2x8x128xf32>
    %cst = arith.constant dense<0.000000e+00> : vector<8x128xf32>
    %9 = vector.multi_reduction <add>, %8, %cst [0] : vector<2x8x128xf32> to vector<8x128xf32>
    %10 = arith.addf %7, %9 : vector<8x128xf32>
    %c0_6 = arith.constant 0 : index
    %c0_7 = arith.constant 0 : index
    %11 = vector.load %arg5[%c0_6, %c0_7] : memref<8x128xf32, #tpu.memory_space<vmem>>, vector<8x128xf32>
    tpu.vector_store %arg5[%c0_6, %c0_7], %10 {strides = array<i32>} : memref<8x128xf32, #tpu.memory_space<vmem>>, vector<8x128xf32>,
    %c0_i32_8 = arith.constant 0 : i32
    %12 = arith.cmpi eq, %arg1, %c0_i32_8 : i32
    %13 = arith.extui %12 : i1 to i32
    %c0_i32_9 = arith.constant 0 : i32
    %14 = arith.cmpi ne, %13, %c0_i32_9 : i32
    scf.if %14 {
      %c0_10 = arith.constant 0 : index
      %c0_11 = arith.constant 0 : index
      %15 = vector.load %arg5[%c0_10, %c0_11] : memref<8x128xf32, #tpu.memory_space<vmem>>, vector<8x128xf32>
      %cst_12 = arith.constant 4.8828125E-4 : f32
      %16 = vector.broadcast %cst_12 : f32 to vector<8x128xf32>
      %17 = arith.mulf %15, %16 : vector<8x128xf32>
      %c0_13 = arith.constant 0 : index
      %c0_14 = arith.constant 0 : index
      %18 = vector.load %arg4[%c0_13, %c0_14] : memref<8x128xf32, #tpu.memory_space<vmem>>, vector<8x128xf32>
      tpu.vector_store %arg4[%c0_13, %c0_14], %17 {strides = array<i32>} : memref<8x128xf32, #tpu.memory_space<vmem>>, vector<8x128xf32>,
    } else {
    }
    return
  }
  func.func @transform_0(%arg0: i32, %arg1: i32) -> (i32, i32) {
    %c1_i32 = arith.constant 1 : i32
    %0 = arith.muli %arg0, %c1_i32 : i32
    %1 = arith.addi %0, %arg1 : i32
    %c0_i32 = arith.constant 0 : i32
    %2 = arith.minsi %1, %c0_i32 : i32
    %c0_i32_0 = arith.constant 0 : i32
    %c0_i32_1 = arith.constant 0 : i32
    return %2, %c0_i32_0 : i32, i32
  }
  func.func @transform_1(%arg0: i32, %arg1: i32) -> (i32, i32) {
    %c1_i32 = arith.constant 1 : i32
    %0 = arith.muli %arg0, %c1_i32 : i32
    %1 = arith.addi %0, %arg1 : i32
    %c0_i32 = arith.constant 0 : i32
    %2 = arith.minsi %1, %c0_i32 : i32
    %c0_i32_0 = arith.constant 0 : i32
    %c0_i32_1 = arith.constant 0 : i32
    return %2, %c0_i32_0 : i32, i32
  }
  func.func @transform_2(%arg0: i32, %arg1: i32) -> (i32, i32) {
    %c0_i32 = arith.constant 0 : i32
    %c0_i32_0 = arith.constant 0 : i32
    return %arg0, %c0_i32 : i32, i32
  }
}

</mosaic_0001>

<bundles_post_ra>
// kernel: tpu_custom_call.1
= control target key start
LH: loop header
LB: loop body
LE: loop exit
PB: predicated region body
PF: predicated region fallthrough
CT: control target
= control target key end

     0   :  { %7 = vsyncpa [#allocation4], 0  ;;  %s203_s0 = inlined_call_operand.hbm [shape: f32[16,128], index: 0, kind: input, shape index: {}]   ;;  %s204_s1 = inlined_call_operand.hbm [shape: f32[16,128], index: 1, kind: input, shape index: {}]   ;;  %s205_s2 = inlined_call_operand.hbm [shape: f32[8,128], index: 2, kind: output, shape index: {}]  }
   0x1   :  { %8 = vsyncpa [#allocation7], 0 }
   0x2   :  { %9 = vsyncpa [#allocation5], 0  ;;  %s174_s9 = smov [#allocation3]  }
   0x3   :  { %s21_s10 = sshll.u32 %s174_s9, 4  ;;  %s22_s10 = int_to_ptr.vmem [resolvable:$true] %s21_s10 }
   0x4   :  { %s116_s11 = scalar_lea.vmem %s22_s10, 256  ;;  %p121_p1 = scmp.lt.s32.totalorder %s22_s10, %s22_s10 }
   0x5   :  { %p117_p0 = scmp.ne.s32.totalorder %s22_s10, %s116_s11  ;;  %p122_p2 = scmp.lt.s32.totalorder %s116_s11, %s116_s11 }
   0x7   :  { %p123_p3 = por %p122_p2, %p121_p1 }
   0x9   :  { %p124_p4 = pnand %p123_p3, %p117_p0 }
   0xb   :  { %127 = shalt.err (!%p124_p4)
}
   0xc   :  { %s175_s12 = smov 128   ;;  %s176_s13 = smov 8  }
   0xd   :  { %27 = dma.hbm_to_vmem [thread:$0]  %s203_s0, 256, %s22_s10, [#allocation4], %s175_s12, %s175_s12, %s176_s13  }
   0xe   :  { %s177_s16 = smov [#allocation6]  }
   0xf   :  { %s39_s17 = sshll.u32 %s177_s16, 4  ;;  %s40_s17 = int_to_ptr.vmem [resolvable:$true] %s39_s17 }
  0x10   :  { %s136_s18 = scalar_lea.vmem %s40_s17, 256  ;;  %p141_p6 = scmp.lt.s32.totalorder %s40_s17, %s40_s17 }
  0x11   :  { %p137_p5 = scmp.ne.s32.totalorder %s40_s17, %s136_s18  ;;  %p142_p7 = scmp.lt.s32.totalorder %s136_s18, %s136_s18 }
  0x13   :  { %p143_p8 = por %p142_p7, %p141_p6 }
  0x15   :  { %p144_p9 = pnand %p143_p8, %p137_p5 }
  0x17   :  { %147 = shalt.err (!%p144_p9)
}
  0x18   :  { %45 = dma.hbm_to_vmem [thread:$0]  %s204_s1, 256, %s40_s17, [#allocation7], %s175_s12, %s175_s12, %s176_s13  }
  0x19   :  { %168 = dma.done.wait [#allocation4], 256  }
  0x1a   :  { %169 = vsyncadd [#allocation4], 4294967040 }
  0x1b   :  { %170 = dma.done.wait [#allocation7], 256  }
  0x1c   :  { %171 = vsyncadd [#allocation7], 4294967040  ;;  %v65_v0 = vld [vmem:[#allocation3] sm:$0xff]  ;;  %v66_v1 = vld [vmem:[#allocation3 + $0x8] sm:$0xff]  ;;  %s178_s0 = smov [#allocation8]  }
  0x1d   :  { %v67_v2 = vld [vmem:[#allocation6] sm:$0xff]  ;;  %v68_v3 = vld [vmem:[#allocation6 + $0x8] sm:$0xff]  ;;  %s89_s21 = sshll.u32 %s178_s0, 4  ;;  %s90_s21 = int_to_ptr.vmem [resolvable:$true] %s89_s21 }
  0x1e   :  { %v69_v4 = vsub.f32 %v65_v0, %v67_v2  ;;  %v70_v5 = vsub.f32 %v66_v1, %v68_v3  ;;  %s148_s22 = scalar_lea.vmem %s90_s21, 128  ;;  %p153_p11 = scmp.lt.s32.totalorder %s90_s21, %s90_s21 }
  0x1f   :  { %p149_p10 = scmp.ne.s32.totalorder %s90_s21, %s148_s22  ;;  %p154_p12 = scmp.lt.s32.totalorder %s148_s22, %s148_s22 }
  0x20   :  { %v71_v6 = vmul.f32 %v69_v4, %v69_v4  ;;  %v72_v7 = vmul.f32 %v70_v5, %v70_v5 }
  0x21   :  { %p155_p13 = por %p154_p12, %p153_p11 }
  0x22   :  { %v74_v8 = vadd.f32 %v72_v7, %v71_v6 }
  0x23   :  { %p156_p0 = pnand %p155_p13, %p149_p10 }
  0x24   :  { %v81_v9 = vmul.f32 0.00048828125, %v74_v8 }
  0x26   :  { %82 = vst [vmem:[#allocation8] sm:$0xff] %v81_v9 }
  0x27   :  { %159 = shalt.err (!%p156_p0)
}
  0x28   :  { %92 = dma.vmem_to_hbm [thread:$0]  %s90_s21, 128, %s205_s2, [#allocation5]  }
  0x29   :  { %172 = dma.done.wait [#allocation5], 128  }
  0x2a   :  { %173 = vsyncadd [#allocation5], 4294967168 }
  0x2b   :  { %96 = vsyncpa [#allocation4], 1 }
  0x2c   :  { %97 = vsyncpa [#allocation7], 1 }
  0x2d   :  { %98 = vsyncpa [#allocation5], 1 }

</bundles_post_ra>
